<compile_context>
chip_gen: v7x
topology: tpu7x:2x2x1
jax: 0.10.0
libtpu: 0.0.40
codegen_flags: <defaults>
</compile_context>

<pallas_src>
import functools

import jax
import jax.numpy as jnp
from jax import lax
from jax.experimental import pallas as pl
from jax.experimental.pallas import tpu as pltpu


def _round_up(x, m):
    return (x + m - 1) // m * m


def _barlow_full_batch_kernel(b1_ref, b2_ref, out_ref, *, scale):
    """One (TD, TD) correlation tile from full-batch panels (no k axis)."""
    s = lax.dot_general(
        b1_ref[...], b2_ref[...],
        dimension_numbers=(((0,), (0,)), ((), ())),
        preferred_element_type=jnp.float32)
    out_ref[...] = jnp.full(out_ref.shape, scale * jnp.sum(s * s),
                            dtype=jnp.float32)


def _barlow_tiled_kernel(b1_ref, b2_ref, out_ref, acc_ref, *, scale):
    """One (TD, TD) correlation tile, accumulated over batch chunks (k axis)."""
    # All program_id/num_programs reads are at the top level of the kernel
    # (never inside a pl.when body) so the kernel also lowers in interpret mode.
    k = pl.program_id(2)
    nk = pl.num_programs(2)

    @pl.when(k == 0)
    def _init():
        acc_ref[...] = jnp.zeros_like(acc_ref)

    # s += b1_tile^T @ b2_tile, contracting the batch dim directly on the MXU.
    acc_ref[...] += lax.dot_general(
        b1_ref[...], b2_ref[...],
        dimension_numbers=(((0,), (0,)), ((), ())),
        preferred_element_type=jnp.float32)

    @pl.when(k == nk - 1)
    def _finalize():
        s = acc_ref[...]
        out_ref[...] = jnp.full(out_ref.shape, scale * jnp.sum(s * s),
                                dtype=jnp.float32)


def barlow_twins_loss(batch1, batch2, C=1.0, *,
                      block_d=1024, block_k=2048,
                      compute_dtype=jnp.bfloat16):
    """Pallas Barlow Twins loss. batch1/batch2: (N, D). Returns scalar f32."""
    assert batch1.shape == batch2.shape and batch1.ndim == 2
    n, d = batch1.shape
    C = float(C)

    cdtype = jnp.dtype(compute_dtype) if compute_dtype is not None else jnp.dtype(batch1.dtype)
    itemsize = cdtype.itemsize
    sub = max(8, 32 // itemsize)       # sublane multiple: 8 f32, 16 bf16, 32 i8

    b1 = batch1.astype(cdtype)
    b2 = batch2.astype(cdtype)

    # Diagonal correction as a tiny O(N*D) XLA pass (keeps the kernel
    # branch-free).  bf16*bf16 products are exact in f32, matching the MXU.
    diag = jnp.sum(b1.astype(jnp.float32) * b2.astype(jnp.float32), axis=0) / n
    diag_corr = jnp.sum((diag - 1.0) ** 2 - C * diag * diag)

    # Feature-dim tiling: prefer 256-multiples (v6e/v7x MXU) unless D fits a
    # single 128-aligned tile.  NOTE(v7x): very small D collapses (i, j) to a
    # single tile, leaving one TC idle — negligible at that size.
    block_d = max(256, (int(block_d) // 256) * 256)
    d_pad = _round_up(d, 128)
    if d_pad <= block_d:
        td = d_pad
    else:
        td = block_d
        d_pad = _round_up(d, td)
    gi = gj = d_pad // td

    n_pad = _round_up(n, sub)
    scale = C / (float(n) * float(n))

    # Full-batch path when the (N_pad, TD) panels fit comfortably in VMEM.
    full_bytes = 2 * 2 * n_pad * td * itemsize + 4 * td * td
    use_full_batch = (n_pad <= int(block_k)) and (full_bytes <= (28 << 20))

    if not use_full_batch:
        tk = _round_up(max(sub, min(int(block_k), n)), sub)
        # Keep double-buffered inputs + f32 accumulator well under v7x's 64 MiB.
        while (2 * 2 * tk * td * itemsize + 4 * td * td) > (40 << 20) and tk > sub:
            tk = max(sub, _round_up(tk // 2, sub))
        n_pad = _round_up(n, tk)
        gk = n_pad // tk
        est = 2 * 2 * tk * td * itemsize + 4 * td * td
    else:
        est = full_bytes

    vmem_limit = int(min(max(est + (16 << 20), 32 << 20), 56 << 20))

    if (n_pad, d_pad) != (n, d):
        pad = ((0, n_pad - n), (0, d_pad - d))
        b1 = jnp.pad(b1, pad)   # zero rows/cols contribute nothing to sum(c^2)
        b2 = jnp.pad(b2, pad)

    if use_full_batch:
        kernel = functools.partial(_barlow_full_batch_kernel, scale=scale)
        partials = pl.pallas_call(
            kernel,
            out_shape=jax.ShapeDtypeStruct((gi, gj, 8, 128), jnp.float32),
            grid_spec=pltpu.PrefetchScalarGridSpec(
                num_scalar_prefetch=0,
                grid=(gi, gj),
                in_specs=[
                    # j innermost: the b1 panel's block index is constant
                    # across j, so Pallas skips its re-DMA (1x HBM read).
                    pl.BlockSpec((n_pad, td), lambda i, j: (0, i)),
                    pl.BlockSpec((n_pad, td), lambda i, j: (0, j)),
                ],
                out_specs=pl.BlockSpec((1, 1, 8, 128),
                                       lambda i, j: (i, j, 0, 0)),
            ),
            compiler_params=pltpu.CompilerParams(
                dimension_semantics=("parallel", "parallel"),
                vmem_limit_bytes=vmem_limit),
        )(b1, b2)
    else:
        kernel = functools.partial(_barlow_tiled_kernel, scale=scale)
        partials = pl.pallas_call(
            kernel,
            out_shape=jax.ShapeDtypeStruct((gi, gj, 8, 128), jnp.float32),
            grid_spec=pltpu.PrefetchScalarGridSpec(
                num_scalar_prefetch=0,
                grid=(gi, gj, gk),
                in_specs=[
                    pl.BlockSpec((tk, td), lambda i, j, k: (k, i)),
                    pl.BlockSpec((tk, td), lambda i, j, k: (k, j)),
                ],
                out_specs=pl.BlockSpec((1, 1, 8, 128),
                                       lambda i, j, k: (i, j, 0, 0)),
                scratch_shapes=[pltpu.VMEM((td, td), jnp.float32)],
            ),
            compiler_params=pltpu.CompilerParams(
                dimension_semantics=("parallel", "parallel", "arbitrary"),
                vmem_limit_bytes=vmem_limit),
        )(b1, b2)

    # Each tile broadcast its scalar partial (C/N^2 * sum(s^2)) across a
    # lane-dense (8, 128) block; finish the tiny reduction in XLA.
    off_all = jnp.sum(partials[:, :, 0, 0])
    return off_all + diag_corr


def _reference(batch1, batch2, C=1.0):
    """Pure-JAX reference mirroring the PyTorch module (f32)."""
    c = (batch1.T @ batch2) / batch1.shape[0]
    diag = jnp.diagonal(c)
    on_diag = jnp.sum((diag - 1.0) ** 2)
    off_diag = jnp.sum(c ** 2) - jnp.sum(diag ** 2)
    return on_diag + C * off_diag


if __name__ == "__main__":
    key = jax.random.PRNGKey(0)
    k1, k2, k3, k4 = jax.random.split(key, 4)

    # Module-scale shapes: batch=8 pairs of 32-dim embeddings.
    b1 = jax.random.normal(k1, (8, 32), dtype=jnp.float32)
    b2 = jax.random.normal(k2, (8, 32), dtype=jnp.float32)
    ref = _reference(b1, b2, C=1.0)

    # Default path (bf16 MXU inputs, f32 accumulation): loose tolerance vs f32.
    out_bf16 = jax.block_until_ready(barlow_twins_loss(b1, b2, C=1.0))
    assert jnp.allclose(out_bf16, ref, rtol=3e-2, atol=3e-2), (out_bf16, ref)

    # f32 path, tight tolerance (exercises the full-batch single-tile kernel).
    out_f32 = jax.block_until_ready(
        barlow_twins_loss(b1, b2, C=1.0, compute_dtype=jnp.float32))
    assert jnp.allclose(out_f32, ref, rtol=1e-4, atol=1e-4), (out_f32, ref)

    # Multi-tile / padded-D / k-chunked accumulator path (small shapes).
    b3 = jax.random.normal(k3, (24, 500), dtype=jnp.float32)
    b4 = jax.random.normal(k4, (24, 500), dtype=jnp.float32)
    ref2 = _reference(b3, b4, C=0.5)
    out2 = jax.block_until_ready(
        barlow_twins_loss(b3, b4, C=0.5, block_d=256, block_k=8,
                          compute_dtype=jnp.float32))
    assert jnp.allclose(out2, ref2, rtol=1e-4, atol=1e-4), (out2, ref2)

    print("KERNEL_OK")
</pallas_src>

<mosaic_0001>
module attributes {stable_mosaic.version = 11 : i64} {
  func.func @_barlow_full_batch_kernel(%arg0: i32, %arg1: i32, %arg2: memref<16x128xbf16, #tpu.memory_space<vmem>>, %arg3: memref<16x128xbf16, #tpu.memory_space<vmem>>, %arg4: memref<1x1x8x128xf32, #tpu.memory_space<vmem>>) attributes {dimension_semantics = [#tpu.dimension_semantics<parallel>, #tpu.dimension_semantics<parallel>], iteration_bounds = array<i64: 1, 1>, scalar_prefetch = 0 : i64, scratch_operands = 0 : i64, tpu.core_type = #tpu.core_type<tc>, window_params = [{transform_indices = @transform_0, window_bounds = array<i64: 16, 128>}, {transform_indices = @transform_1, window_bounds = array<i64: 16, 128>}, {transform_indices = @transform_2, window_bounds = array<i64: 1, 1, 8, 128>}]} {
    %c0 = arith.constant 0 : index
    %c0_0 = arith.constant 0 : index
    %0 = vector.load %arg2[%c0, %c0_0] : memref<16x128xbf16, #tpu.memory_space<vmem>>, vector<16x128xbf16>
    %c0_1 = arith.constant 0 : index
    %c0_2 = arith.constant 0 : index
    %1 = vector.load %arg3[%c0_1, %c0_2] : memref<16x128xbf16, #tpu.memory_space<vmem>>, vector<16x128xbf16>
    %cst = arith.constant dense<0.000000e+00> : vector<128x128xf32>
    %2 = tpu.matmul %0, %1, %cst {dimension_numbers = #tpu.dot_dimension_numbers<[0], [0], [1], [1], [0, 1, 1, 1], [], []>} : vector<16x128xbf16>, vector<16x128xbf16>, vector<128x128xf32> -> vector<128x128xf32>
    %3 = arith.mulf %2, %2 : vector<128x128xf32>
    %4 = vector.shape_cast %3 : vector<128x128xf32> to vector<1x128x128xf32>
    %cst_3 = arith.constant dense<0.000000e+00> : vector<1xf32>
    %5 = vector.multi_reduction <add>, %4, %cst_3 [1, 2] : vector<1x128x128xf32> to vector<1xf32>
    %6 = vector.shape_cast %5 : vector<1xf32> to vector<1x1x1xf32>
    %7 = vector.extract %6[0, 0, 0] : f32 from vector<1x1x1xf32>
    %cst_4 = arith.constant 1.562500e-02 : f32
    %8 = arith.mulf %cst_4, %7 : f32
    %9 = vector.broadcast %8 : f32 to vector<1x1x8x128xf32>
    %c0_5 = arith.constant 0 : index
    %c0_6 = arith.constant 0 : index
    %c0_7 = arith.constant 0 : index
    %c0_8 = arith.constant 0 : index
    %10 = vector.load %arg4[%c0_5, %c0_6, %c0_7, %c0_8] : memref<1x1x8x128xf32, #tpu.memory_space<vmem>>, vector<1x1x8x128xf32>
    tpu.vector_store %arg4[%c0_5, %c0_6, %c0_7, %c0_8], %9 {strides = array<i32>} : memref<1x1x8x128xf32, #tpu.memory_space<vmem>>, vector<1x1x8x128xf32>,
    return
  }
  func.func @transform_0(%arg0: i32, %arg1: i32) -> (i32, i32) {
    %c0_i32 = arith.constant 0 : i32
    %c0_i32_0 = arith.constant 0 : i32
    return %c0_i32, %arg0 : i32, i32
  }
  func.func @transform_1(%arg0: i32, %arg1: i32) -> (i32, i32) {
    %c0_i32 = arith.constant 0 : i32
    %c0_i32_0 = arith.constant 0 : i32
    return %c0_i32, %arg1 : i32, i32
  }
  func.func @transform_2(%arg0: i32, %arg1: i32) -> (i32, i32, i32, i32) {
    %c0_i32 = arith.constant 0 : i32
    %c0_i32_0 = arith.constant 0 : i32
    %c0_i32_1 = arith.constant 0 : i32
    return %arg0, %arg1, %c0_i32, %c0_i32_0 : i32, i32, i32, i32
  }
}

</mosaic_0001>

<bundles_post_ra>
// kernel: tpu_custom_call.1
= control target key start
LH: loop header
LB: loop body
LE: loop exit
PB: predicated region body
PF: predicated region fallthrough
CT: control target
= control target key end

     0   :  { %7 = vsyncpa [#allocation3], 0  ;;  %s439_s0 = inlined_call_operand.hbm [shape: bf16[16,128], index: 0, kind: input, shape index: {}]   ;;  %s440_s1 = inlined_call_operand.hbm [shape: bf16[16,128], index: 1, kind: input, shape index: {}]   ;;  %s441_s2 = inlined_call_operand.hbm [shape: f32[1,1,8,128], index: 2, kind: output, shape index: {}]  }
   0x1   :  { %8 = vsyncpa [#allocation6], 0 }
   0x2   :  { %9 = vsyncpa [#allocation4], 0  ;;  %s375_s9 = smov [#allocation2]   ;;  %s303_s13 = scalar_lea.hbm %s439_s0, 128 }
   0x3   :  { %s15_s10 = sshll.u32 %s375_s9, 4  ;;  %p304_p0 = scmp.ne.s32.totalorder %s439_s0, %s303_s13  ;;  %s16_s10 = int_to_ptr.vmem [resolvable:$true] %s15_s10 }
   0x4   :  { %p307_p1 = scmp.lt.u32.totalorder %s303_s13, %s439_s0 }
   0x6   :  { %p309_p2 = pnand %p307_p1, %p304_p0 }
   0x8   :  { %312 = shalt.err (!%p309_p2)
}
   0x9   :  { %s313_s18 = scalar_lea.vmem %s16_s10, 128  ;;  %p318_p4 = scmp.lt.s32.totalorder %s16_s10, %s16_s10 }
   0xa   :  { %p314_p3 = scmp.ne.s32.totalorder %s16_s10, %s313_s18  ;;  %p319_p5 = scmp.lt.s32.totalorder %s313_s18, %s313_s18 }
   0xc   :  { %p320_p6 = por %p319_p5, %p318_p4 }
   0xe   :  { %p321_p7 = pnand %p320_p6, %p314_p3 }
  0x10   :  { %324 = shalt.err (!%p321_p7)
}
  0x11   :  { %s376_s19 = smov 64   ;;  %s377_s20 = smov 4  }
  0x12   :  { %21 = dma.hbm_to_vmem [thread:$0]  %s439_s0, 128, %s16_s10, [#allocation3], %s376_s19, %s376_s19, %s377_s20  }
  0x13   :  { %s378_s23 = smov [#allocation5]   ;;  %s325_s27 = scalar_lea.hbm %s440_s1, 128 }
  0x14   :  { %s27_s24 = sshll.u32 %s378_s23, 4  ;;  %p326_p8 = scmp.ne.s32.totalorder %s440_s1, %s325_s27  ;;  %s28_s24 = int_to_ptr.vmem [resolvable:$true] %s27_s24 }
  0x15   :  { %p329_p9 = scmp.lt.u32.totalorder %s325_s27, %s440_s1 }
  0x17   :  { %p331_p10 = pnand %p329_p9, %p326_p8 }
  0x19   :  { %334 = shalt.err (!%p331_p10)
}
  0x1a   :  { %s335_s4 = scalar_lea.vmem %s28_s24, 128  ;;  %p340_p12 = scmp.lt.s32.totalorder %s28_s24, %s28_s24 }
  0x1b   :  { %p336_p11 = scmp.ne.s32.totalorder %s28_s24, %s335_s4  ;;  %p341_p13 = scmp.lt.s32.totalorder %s335_s4, %s335_s4 }
  0x1d   :  { %p342_p0 = por %p341_p13, %p340_p12 }
  0x1f   :  { %p343_p1 = pnand %p342_p0, %p336_p11 }
  0x21   :  { %346 = shalt.err (!%p343_p1)
}
  0x22   :  { %33 = dma.hbm_to_vmem [thread:$0]  %s440_s1, 128, %s28_s24, [#allocation6], %s376_s19, %s376_s19, %s377_s20  }
  0x23   :  { %369 = dma.done.wait [#allocation3], 128  }
  0x24   :  { %370 = vsyncadd [#allocation3], 4294967168 }
  0x25   :  { %371 = dma.done.wait [#allocation6], 128  }
  0x26   :  { %372 = vsyncadd [#allocation6], 4294967168  ;;  %v301_v0 = vld [vmem:[#allocation2] sm:$0xff]   ;;  %v302_v1 = vld [vmem:[#allocation5] sm:$0xff]   ;;  %vm73_vm0 = vcmask 130048   ;;  %s379_s1 = smov [#allocation7]  }
  0x27   :  { %51 = vxpose.xlu0.c.b16.start.end [1/1] (short) %v301_v0, 128  ;;  %273 = vmatprep.subr.bf16.mxu0 %v302_v1  ;;  %s244_s6 = sshll.u32 %s379_s1, 4  ;;  %s245_s6 = int_to_ptr.vmem [resolvable:$true] %s244_s6 }
  0x28   :  { %291 = vmatprep.subr.bf16.mxu1 %v302_v1  ;;  %274 = vmatpush3.bf16.msra.mxu0 %v302_v1  ;;  %s347_s9 = scalar_lea.vmem %s245_s6, 128  ;;  %p352_p3 = scmp.lt.s32.totalorder %s245_s6, %s245_s6 }
  0x29   :  { %292 = vmatpush3.bf16.msra.mxu1 %v302_v1  ;;  %p348_p2 = scmp.ne.s32.totalorder %s245_s6, %s347_s9  ;;  %p353_p4 = scmp.lt.s32.totalorder %s347_s9, %s347_s9 }
  0x2b   :  { %p354_p5 = por %p353_p4, %p352_p3 }
  0x2d   :  { %p355_p6 = pnand %p354_p5, %p348_p2 }
  0x8d   :  { %v59_v2 = vpop.trf.xlu0 }
  0x8e   :  { %275 = vmatprep.mubr.msk.bf16.mxu0 %vm73_vm0, %v59_v2 }
  0x91   :  { %v60_v3 = vpop.trf.xlu0 }
  0x92   :  { %276 = vmatmul.mubr.msk.bf16.vlgmr.msra.gmra.mrb[0].mxu0 %vm73_vm0, %v60_v3 }
  0x95   :  { %v61_v4 = vpop.trf.xlu0 }
  0x96   :  { %279 = vmatprep.mubr.msk.bf16.mxu0 %vm73_vm0, %v61_v4 }
  0x99   :  { %v62_v5 = vpop.trf.xlu0 }
  0x9a   :  { %280 = vmatmul.mubr.msk.bf16.gmra.mrb[4].mxu0 %vm73_vm0, %v62_v5 }
  0x9d   :  { %v63_v6 = vpop.trf.xlu0 }
  0x9e   :  { %283 = vmatprep.mubr.msk.bf16.mxu1 %vm73_vm0, %v63_v6 }
  0xa1   :  { %v64_v7 = vpop.trf.xlu0 }
  0xa2   :  { %284 = vmatmul.mubr.msk.bf16.vlgmr.msra.gmra.mrb[0].mxu1 %vm73_vm0, %v64_v7 }
  0xa5   :  { %v65_v8 = vpop.trf.xlu0 }
  0xa6   :  { %287 = vmatprep.mubr.msk.bf16.mxu1 %vm73_vm0, %v65_v8 }
  0xa9   :  { %v66_v9 = vpop.trf.xlu0 }
  0xaa   :  { %288 = vmatmul.mubr.msk.bf16.gmra.mrb[4].mxu1 %vm73_vm0, %v66_v9 }
 0x165   :  { %v277_v10 = vpop.f32.mrb[0].mxu0 }
 0x166   :  { %v132_v11 = vpop.f32.mrb[1].mxu0  ;;  %v197_v16 = vmul.f32 %v277_v10, %v277_v10 }
 0x167   :  { %v278_v12 = vpop.f32.mrb[2].mxu0  ;;  %v195_v14 = vmul.f32 %v132_v11, %v132_v11 }
 0x168   :  { %v135_v13 = vpop.f32.mrb[3].mxu0  ;;  %v198_v18 = vmul.f32 %v278_v12, %v278_v12 }
 0x169   :  { %v196_v15 = vmul.f32 %v135_v13, %v135_v13 }
 0x16b   :  { %v211_v17 = vadd.f32 %v196_v15, %v195_v14 }
 0x16d   :  { %v212_v19 = vadd.f32 %v211_v17, %v197_v16  ;;  %v281_v20 = vpop.f32.mrb[4].mxu0 }
 0x16e   :  { %v148_v21 = vpop.f32.mrb[5].mxu0  ;;  %v201_v28 = vmul.f32 %v281_v20, %v281_v20 }
 0x16f   :  { %v199_v22 = vmul.f32 %v148_v21, %v148_v21  ;;  %v213_v23 = vadd.f32 %v212_v19, %v198_v18  ;;  %v282_v24 = vpop.f32.mrb[6].mxu0 }
 0x170   :  { %v151_v25 = vpop.f32.mrb[7].mxu0  ;;  %v202_v30 = vmul.f32 %v282_v24, %v282_v24 }
 0x171   :  { %v214_v26 = vadd.f32 %v213_v23, %v199_v22  ;;  %v200_v27 = vmul.f32 %v151_v25, %v151_v25 }
 0x173   :  { %v215_v29 = vadd.f32 %v214_v26, %v200_v27 }
 0x175   :  { %v216_v31 = vadd.f32 %v215_v29, %v201_v28  ;;  %v285_v32 = vpop.f32.mrb[0].mxu1 }
 0x176   :  { %v164_v33 = vpop.f32.mrb[1].mxu1  ;;  %v205_v40 = vmul.f32 %v285_v32, %v285_v32 }
 0x177   :  { %v203_v34 = vmul.f32 %v164_v33, %v164_v33  ;;  %v217_v35 = vadd.f32 %v216_v31, %v202_v30  ;;  %v286_v36 = vpop.f32.mrb[2].mxu1 }
 0x178   :  { %v167_v37 = vpop.f32.mrb[3].mxu1  ;;  %v206_v42 = vmul.f32 %v286_v36, %v286_v36 }
 0x179   :  { %v218_v38 = vadd.f32 %v217_v35, %v203_v34  ;;  %v204_v39 = vmul.f32 %v167_v37, %v167_v37 }
 0x17b   :  { %v219_v41 = vadd.f32 %v218_v38, %v204_v39 }
 0x17d   :  { %v220_v43 = vadd.f32 %v219_v41, %v205_v40  ;;  %v289_v44 = vpop.f32.mrb[4].mxu1 }
 0x17e   :  { %v180_v45 = vpop.f32.mrb[5].mxu1  ;;  %v209_v52 = vmul.f32 %v289_v44, %v289_v44 }
 0x17f   :  { %v207_v46 = vmul.f32 %v180_v45, %v180_v45  ;;  %v221_v47 = vadd.f32 %v220_v43, %v206_v42  ;;  %v290_v48 = vpop.f32.mrb[6].mxu1 }
 0x180   :  { %v183_v49 = vpop.f32.mrb[7].mxu1  ;;  %v210_v54 = vmul.f32 %v290_v48, %v290_v48 }
 0x181   :  { %v222_v50 = vadd.f32 %v221_v47, %v207_v46  ;;  %v208_v51 = vmul.f32 %v183_v49, %v183_v49 }
 0x183   :  { %v223_v53 = vadd.f32 %v222_v50, %v208_v51 }
 0x185   :  { %v224_v55 = vadd.f32 %v223_v53, %v209_v52 }
 0x187   :  { %v225_v56 = vadd.f32 %v224_v55, %v210_v54 }
 0x189   :  { %226 = vadd.xlane.f32.xlu0 %v225_v56 }
 0x216   :  { %v227_v57 = vpop.xlane.xlu0 %226 }
 0x217   :  { %v228_v58 = vrot.slane %v227_v57, 4 }
 0x219   :  { %v229_v59 = vadd.f32 %v228_v58, %v227_v57 }
 0x21b   :  { %v230_v60 = vrot.slane %v229_v59, 2 }
 0x21d   :  { %v231_v61 = vadd.f32 %v230_v60, %v229_v59 }
 0x21f   :  { %v232_v62 = vrot.slane %v231_v61, 1 }
 0x221   :  { %v233_v63 = vadd.f32 %v232_v62, %v231_v61 }
 0x223   :  { %293 = vpush %v233_v63 }
 0x254   :  { %s294_s7 = spop %293 }
 0x255   :  { %s235_s8 = smul.f32 0.015625, %s294_s7 }
 0x257   :  { %v236_v0 = vstv %s235_s8 }
 0x258   :  { %237 = vst [vmem:[#allocation7] sm:$0xff] %v236_v0 }
 0x259   :  { %358 = shalt.err (!%p355_p6)
}
 0x25a   :  { %s359_s12 = scalar_lea.hbm %s441_s2, 128 }
 0x25b   :  { %p360_p7 = scmp.ne.s32.totalorder %s441_s2, %s359_s12  ;;  %p363_p8 = scmp.lt.u32.totalorder %s359_s12, %s441_s2 }
 0x25d   :  { %p365_p9 = pnand %p363_p8, %p360_p7 }
 0x25f   :  { %368 = shalt.err (!%p365_p9)
}
 0x260   :  { %247 = dma.vmem_to_hbm [thread:$0]  %s245_s6, 128, %s441_s2, [#allocation4]  }
 0x261   :  { %373 = dma.done.wait [#allocation4], 128  }
 0x262   :  { %374 = vsyncadd [#allocation4], 4294967168 }
 0x263   :  { %251 = vsyncpa [#allocation3], 1 }
 0x264   :  { %252 = vsyncpa [#allocation6], 1 }
 0x265   :  { %253 = vsyncpa [#allocation4], 1 }

</bundles_post_ra>
